<compile_context>
chip_gen: v6e
topology: v6e:2x2x1
jax: 0.10.0
libtpu: 0.0.40
codegen_flags: <defaults>
</compile_context>

<pallas_src>
import functools

import jax
import jax.numpy as jnp
from jax import lax
from jax.experimental import pallas as pl
from jax.experimental.pallas import tpu as pltpu


def _conv_bn_relu_kernel(x_ref, w_ref, b_ref, o_ref, *, width, kh, kw, out_cols):
    """Fused 3x3 valid conv + folded BN + ReLU for one batch element.

    x_ref : (1, Cin, L_in)       NCHW input, spatial flattened onto lanes and
                                 zero-padded so every output column is valid.
    w_ref : (Cout, KH*KW*Cin)    BN-folded weights, one lane-dense tile.
    b_ref : (Cout, 1)            BN-folded bias (f32).
    o_ref : (1, Cout, out_cols)  lane-dense output slab (out_cols % 128 == 0).
    """
    x = x_ref[0]                                    # (Cin, L_in), native dtype

    # im2col: stack the KH*KW lane-shifted views along the sublane (K) axis.
    # The lane shifts land on the XLU slot; the channel+tap contraction then
    # rides the MXU as a single K = KH*KW*Cin matmul.
    taps = []
    for dh in range(kh):
        for dw in range(kw):
            s = dh * width + dw
            taps.append(x[:, s:s + out_cols])       # (Cin, out_cols)
    xcol = jnp.concatenate(taps, axis=0)            # (KH*KW*Cin, out_cols)

    y = jnp.dot(w_ref[...], xcol, preferred_element_type=jnp.float32)
    y = jnp.maximum(y + b_ref[...], 0.0)            # bias once, then ReLU
    o_ref[0] = y.astype(o_ref.dtype)                # full, unmasked block store


def block2_forward(x_nchw, params, *, eps=1e-5):
    """Conv2d(3x3, stride=1, padding=0) + BatchNorm2d(eval) + ReLU. NCHW in/out."""
    w, b, gamma, beta, mean, var = params
    n, cin, h, wdt = x_nchw.shape
    cout, _, kh, kw = w.shape
    hout, wout = h - kh + 1, wdt - kw + 1

    # Output slab per sample: hout*W columns rounded up to a lane multiple so
    # the kernel's store is a full, unmasked, 128-aligned block.
    lane = 128
    out_cols = ((hout * wdt + lane - 1) // lane) * lane         # 224 -> 256
    in_cols = out_cols + (kh - 1) * wdt + (kw - 1)              # + conv halo

    # ---- fold eval-mode BN (and conv bias) into the conv weights / bias ----
    scale = gamma / jnp.sqrt(var + eps)                          # (Cout,)
    w_fold = w * scale[:, None, None, None]                      # (Cout,Cin,KH,KW)
    b_fold = (b - mean) * scale + beta                           # (Cout,)

    # Single lane-dense weight tile, K ordered as (dh, dw, cin) to match the
    # in-kernel im2col stacking.  Cast to the input dtype (bf16 stays bf16).
    w2d = jnp.transpose(w_fold, (0, 2, 3, 1)).reshape(cout, kh * kw * cin)
    w2d = w2d.astype(x_nchw.dtype)
    b_col = b_fold.reshape(cout, 1).astype(jnp.float32)

    # Flatten spatial dims onto the lane axis (free reshape) and zero-pad by
    # the halo so all out_cols columns are computable -> full-block stores.
    x_flat = x_nchw.reshape(n, cin, h * wdt)
    x_pad = jnp.pad(x_flat, ((0, 0), (0, 0), (0, in_cols - h * wdt)))

    kernel = functools.partial(_conv_bn_relu_kernel, width=wdt, kh=kh, kw=kw,
                               out_cols=out_cols)

    itemsize = x_nchw.dtype.itemsize
    cost = pl.CostEstimate(
        flops=2 * n * cout * hout * wout * kh * kw * cin,
        transcendentals=0,
        bytes_accessed=int(x_pad.size) * itemsize
        + int(w2d.size) * itemsize
        + int(b_col.size) * 4
        + n * cout * out_cols * itemsize,
    )

    out_flat = pl.pallas_call(
        kernel,
        out_shape=jax.ShapeDtypeStruct((n, cout, out_cols), x_nchw.dtype),
        grid=(n,),
        in_specs=[
            pl.BlockSpec((1, cin, in_cols), lambda i: (i, 0, 0)),
            pl.BlockSpec((cout, kh * kw * cin), lambda i: (0, 0)),
            pl.BlockSpec((cout, 1), lambda i: (0, 0)),
        ],
        out_specs=pl.BlockSpec((1, cout, out_cols), lambda i: (i, 0, 0)),
        compiler_params=pltpu.CompilerParams(
            dimension_semantics=("parallel",)),
        cost_estimate=cost,
    )(x_pad, w2d, b_col)

    # Free reshape back to (Hout, W) rows, then crop the kw-1 halo columns.
    out = out_flat[:, :, :hout * wdt].reshape(n, cout, hout, wdt)
    return out[:, :, :, :wout]


def _reference(x_nchw, params, *, eps=1e-5):
    """Pure-JAX reference (eval-mode BN) for correctness checking."""
    w, b, gamma, beta, mean, var = params
    y = lax.conv_general_dilated(
        x_nchw, w, window_strides=(1, 1), padding="VALID",
        dimension_numbers=("NCHW", "OIHW", "NCHW"),
        precision=lax.Precision.HIGHEST)
    y = y + b[None, :, None, None]
    y = (y - mean[None, :, None, None]) / jnp.sqrt(var[None, :, None, None] + eps)
    y = y * gamma[None, :, None, None] + beta[None, :, None, None]
    return jnp.maximum(y, 0.0)


def _init_params(key, in_channel, out_channel):
    ks = jax.random.split(key, 6)
    w = jax.random.normal(ks[0], (out_channel, in_channel, 3, 3), jnp.float32) * 0.2
    b = jax.random.normal(ks[1], (out_channel,), jnp.float32) * 0.1
    gamma = 1.0 + 0.1 * jax.random.normal(ks[2], (out_channel,), jnp.float32)
    beta = 0.1 * jax.random.normal(ks[3], (out_channel,), jnp.float32)
    mean = 0.05 * jax.random.normal(ks[4], (out_channel,), jnp.float32)
    var = 1.0 + 0.1 * jnp.abs(jax.random.normal(ks[5], (out_channel,), jnp.float32))
    return (w, b, gamma, beta, mean, var)


if __name__ == "__main__":
    key = jax.random.PRNGKey(0)
    k_x, k_p = jax.random.split(key)

    N, Cin, H, W = 2, 4, 16, 16
    Cout = 8

    x = jax.random.normal(k_x, (N, Cin, H, W), jnp.float32)   # NCHW like PyTorch
    params = _init_params(k_p, Cin, Cout)

    out = block2_forward(x, params)
    out = jax.block_until_ready(out)

    ref = _reference(x, params)
    assert out.shape == (N, Cout, H - 2, W - 2), out.shape
    assert jnp.allclose(out, ref, atol=5e-4, rtol=5e-4), \
        float(jnp.max(jnp.abs(out - ref)))

    print("KERNEL_OK")
</pallas_src>

<mosaic_0001>
module attributes {stable_mosaic.version = 11 : i64} {
  func.func @_conv_bn_relu_kernel(%arg0: i32, %arg1: memref<1x4x290xf32, #tpu.memory_space<vmem>>, %arg2: memref<8x36xf32, #tpu.memory_space<vmem>>, %arg3: memref<8x1xf32, #tpu.memory_space<vmem>>, %arg4: memref<1x8x256xf32, #tpu.memory_space<vmem>>) attributes {dimension_semantics = [#tpu.dimension_semantics<parallel>], iteration_bounds = array<i64: 2>, scalar_prefetch = 0 : i64, scratch_operands = 0 : i64, tpu.core_type = #tpu.core_type<tc>, window_params = [{transform_indices = @transform_0, window_bounds = array<i64: 1, 4, 290>}, {pipeline_mode = #tpu.pipeline_mode<synchronous>, transform_indices = @transform_1, window_bounds = array<i64: 8, 36>}, {pipeline_mode = #tpu.pipeline_mode<synchronous>, transform_indices = @transform_2, window_bounds = array<i64: 8, 1>}, {transform_indices = @transform_3, window_bounds = array<i64: 1, 8, 256>}]} {
    %c0 = arith.constant 0 : index
    %c0_0 = arith.constant 0 : index
    %c0_1 = arith.constant 0 : index
    %0 = vector.load %arg1[%c0, %c0_0, %c0_1] : memref<1x4x290xf32, #tpu.memory_space<vmem>>, vector<1x4x290xf32>
    %1 = vector.shape_cast %0 : vector<1x4x290xf32> to vector<4x290xf32>
    %2 = vector.extract_strided_slice %1 {offsets = [0, 0], sizes = [4, 256], strides = [1, 1]} : vector<4x290xf32> to vector<4x256xf32>
    %3 = vector.extract_strided_slice %1 {offsets = [0, 1], sizes = [4, 256], strides = [1, 1]} : vector<4x290xf32> to vector<4x256xf32>
    %4 = vector.extract_strided_slice %1 {offsets = [0, 2], sizes = [4, 256], strides = [1, 1]} : vector<4x290xf32> to vector<4x256xf32>
    %5 = vector.extract_strided_slice %1 {offsets = [0, 16], sizes = [4, 256], strides = [1, 1]} : vector<4x290xf32> to vector<4x256xf32>
    %6 = vector.extract_strided_slice %1 {offsets = [0, 17], sizes = [4, 256], strides = [1, 1]} : vector<4x290xf32> to vector<4x256xf32>
    %7 = vector.extract_strided_slice %1 {offsets = [0, 18], sizes = [4, 256], strides = [1, 1]} : vector<4x290xf32> to vector<4x256xf32>
    %8 = vector.extract_strided_slice %1 {offsets = [0, 32], sizes = [4, 256], strides = [1, 1]} : vector<4x290xf32> to vector<4x256xf32>
    %9 = vector.extract_strided_slice %1 {offsets = [0, 33], sizes = [4, 256], strides = [1, 1]} : vector<4x290xf32> to vector<4x256xf32>
    %10 = vector.extract_strided_slice %1 {offsets = [0, 34], sizes = [4, 256], strides = [1, 1]} : vector<4x290xf32> to vector<4x256xf32>
    %11 = tpu.concatenate %2, %3, %4, %5, %6, %7, %8, %9, %10 in 0 : vector<4x256xf32>, vector<4x256xf32>, vector<4x256xf32>, vector<4x256xf32>, vector<4x256xf32>, vector<4x256xf32>, vector<4x256xf32>, vector<4x256xf32>, vector<4x256xf32> -> vector<36x256xf32>
    %c0_2 = arith.constant 0 : index
    %c0_3 = arith.constant 0 : index
    %12 = vector.load %arg2[%c0_2, %c0_3] : memref<8x36xf32, #tpu.memory_space<vmem>>, vector<8x36xf32>
    %cst = arith.constant dense<0.000000e+00> : vector<8x256xf32>
    %13 = tpu.matmul %12, %11, %cst {dimension_numbers = #tpu.dot_dimension_numbers<[1], [0], [0], [1], [0, 0, 1, 1], [], []>} : vector<8x36xf32>, vector<36x256xf32>, vector<8x256xf32> -> vector<8x256xf32>
    %c0_4 = arith.constant 0 : index
    %c0_5 = arith.constant 0 : index
    %14 = vector.load %arg3[%c0_4, %c0_5] : memref<8x1xf32, #tpu.memory_space<vmem>>, vector<8x1xf32>
    %15 = vector.broadcast %14 : vector<8x1xf32> to vector<8x256xf32>
    %16 = arith.addf %13, %15 : vector<8x256xf32>
    %cst_6 = arith.constant 0.000000e+00 : f32
    %17 = vector.broadcast %cst_6 : f32 to vector<8x256xf32>
    %18 = arith.maximumf %16, %17 : vector<8x256xf32>
    %c0_7 = arith.constant 0 : index
    %c0_8 = arith.constant 0 : index
    %c0_9 = arith.constant 0 : index
    %19 = vector.load %arg4[%c0_7, %c0_8, %c0_9] : memref<1x8x256xf32, #tpu.memory_space<vmem>>, vector<1x8x256xf32>
    %20 = vector.shape_cast %19 : vector<1x8x256xf32> to vector<8x256xf32>
    %21 = vector.shape_cast %18 : vector<8x256xf32> to vector<1x8x256xf32>
    tpu.vector_store %arg4[%c0_7, %c0_8, %c0_9], %21 {strides = array<i32>} : memref<1x8x256xf32, #tpu.memory_space<vmem>>, vector<1x8x256xf32>,
    return
  }
  func.func @transform_0(%arg0: i32) -> (i32, i32, i32) {
    %c0_i32 = arith.constant 0 : i32
    %c0_i32_0 = arith.constant 0 : i32
    %c0_i32_1 = arith.constant 0 : i32
    return %arg0, %c0_i32, %c0_i32_0 : i32, i32, i32
  }
  func.func @transform_1(%arg0: i32) -> (i32, i32) {
    %c0_i32 = arith.constant 0 : i32
    %c0_i32_0 = arith.constant 0 : i32
    %c0_i32_1 = arith.constant 0 : i32
    return %c0_i32, %c0_i32_0 : i32, i32
  }
  func.func @transform_2(%arg0: i32) -> (i32, i32) {
    %c0_i32 = arith.constant 0 : i32
    %c0_i32_0 = arith.constant 0 : i32
    %c0_i32_1 = arith.constant 0 : i32
    return %c0_i32, %c0_i32_0 : i32, i32
  }
  func.func @transform_3(%arg0: i32) -> (i32, i32, i32) {
    %c0_i32 = arith.constant 0 : i32
    %c0_i32_0 = arith.constant 0 : i32
    %c0_i32_1 = arith.constant 0 : i32
    return %arg0, %c0_i32, %c0_i32_0 : i32, i32, i32
  }
}

</mosaic_0001>

<bundles_post_ra>
// kernel: tpu_custom_call.1
= control target key start
LH: loop header
LB: loop body
LE: loop exit
PB: predicated region body
PF: predicated region fallthrough
CT: control target
= control target key end

     0   :  { %8 = vsyncpa [#allocation3], 0  ;;  %s839_s0 = inlined_call_operand.hbm [shape: f32[2,4,290], index: 0, kind: input, shape index: {}]   ;;  %s840_s1 = inlined_call_operand.vmem [shape: f32[8,36], index: 1, kind: input, shape index: {}]   ;;  %s841_s2 = inlined_call_operand.vmem [shape: f32[8,1], index: 2, kind: input, shape index: {}]   ;;  %s842_s3 = inlined_call_operand.hbm [shape: f32[2,8,256], index: 3, kind: output, shape index: {}]  }
   0x1   :  { %10 = vsyncpa [#allocation3 + $0x1], 0 }
   0x2   :  { %11 = vsyncpa [#allocation4], 0 }
   0x3   :  { %13 = vsyncpa [#allocation4 + $0x1], 0  ;;  %s669_s12 = smov 0   ;;  %s671_s13 = smov 0  }
   0x4   :  { %s673_s14 = smov 0   ;;  %s675_s15 = smov 0  }
   0x5 LB: > { %s690_s16 = sadd.s32 4294967295, %s635_s15   ;;  %s465_s17 = sadd.s32 4294967294, %s635_s15   ;;  %s635_s15 = sphi %s675_s15, %s858_s15   ;;  %s631_s14 = sphi %s673_s14, %s857_s14   ;;  %s627_s13 = sphi %s671_s13, %s856_s13   ;;  %s623_s12 = sphi %s669_s12, %s855_s12  }
   0x6   : > { %s694_s18 = sadd.s32 1, %s635_s15   ;;  %s26_s19 = sadd.s32 1, %s631_s14 }
   0x7   : > { %s23_s20 = ssub.s32 %s635_s15, %s694_s18  ;;  %p33_p0 = scmp.ne.s32.totalorder %s631_s14, %s627_s13 }
   0x8   : > { %p24_p1 = scmp.eq.s32.totalorder %s23_s20, 0  ;;  %p34_p2 = scmp.eq.s32.totalorder %s635_s15, 0 }
   0x9   : > { %p39_p3 = scmp.ne.s32.totalorder %s627_s13, %s623_s12  ;;  %p40_p4 = scmp.eq.s32.totalorder %s690_s16, 0 }
   0xa   : > { %s706_s21 = scalar_select %p24_p1, %s631_s14, %s26_s19  }
   0xb   : > { %p35_p5 = por %p34_p2, %p33_p0  ;;  %p708_p6 = por %p40_p4, %p39_p3 }
   0xc   : > { %p105_p7 = scmp.eq.s32.totalorder %s690_s16, 1  ;;  %p111_p8 = scmp.eq.s32.totalorder %s465_s17, 1 }
   0xd   : > { %s845_s22 = scalar_select %p708_p6, 1, 0 }
   0xe   : > { %p495_p10 = scmp.lt.s32.totalorder %s635_s15, 2  ;;  %p715_p11 = por %p105_p7, %p33_p0 }
   0xf   : > { %p719_p12 = por %p111_p8, %p39_p3  ;;  %s137_s25 = sand.u32 1, %s631_s14  }
  0x10   : > { %s846_s23 = scalar_select %p715_p11, 1, 0 }
  0x11   : > { %s847_s24 = scalar_select %p719_p12, 1, 0 }
  0x12   : > { %s481_s26 = smul.u32 192, %s635_s15  ;;  %p730_p13 = pnand %p495_p10, %p35_p5 }
  0x13   : > { %s480_s27 = smul.u32 12, %s137_s25  ;;  %s138_s7 = scalar_lea.sflag [#allocation3], %s137_s25 }
  0x14   : > { %s728_s30 = scalar_lea.hbm %s839_s0, %s481_s26  ;;  %p545_p3 = pneg %p730_p13 }
  0x15   : > { %s141_s5 = scalar_lea.vmem [#allocation2], %s480_s27  ;;  %s543_s8 = scalar_lea.hbm %s728_s30, 192 }
  0x16   : > { %s149_s6 = sshll.u32 %s141_s5, 4  ;;  %p544_p2 = scmp.ne.s32.totalorder %s728_s30, %s543_s8  ;;  %s150_s6 = int_to_ptr.vmem [resolvable:$true] %s149_s6 }
  0x17   : > { %s548_s11 = scalar_lea.hbm %s839_s0, 384  ;;  %p549_p5 = scmp.lt.s32.totalorder %s728_s30, %s839_s0 }
  0x18   : > { %p546_p4 = pnand %p545_p3, %p544_p2  ;;  %p550_p8 = scmp.lt.s32.totalorder %s548_s11, %s543_s8 }
  0x1a   : > { %p547_p7 = pneg %p546_p4  ;;  %p551_p10 = por %p550_p8, %p549_p5 }
  0x1c   : > { %p552_p9 = pnand %p551_p10, %p547_p7 }
  0x1e   : > { %555 = shalt.err (!%p552_p9)
}
  0x1f   : > { %s556_s20 = scalar_lea.vmem %s150_s6, 192  ;;  %s637_s25 = smov [#allocation2]  }
  0x20   : > { %p557_p0 = scmp.ne.s32.totalorder %s150_s6, %s556_s20  ;;  %s561_s26 = sshll.u32 %s637_s25, 4  ;;  %s562_s26 = int_to_ptr.vmem [resolvable:$false] %s561_s26 }
  0x21   : > { %s563_s27 = scalar_lea.vmem %s562_s26, 384  ;;  %p564_p2 = scmp.lt.s32.totalorder %s150_s6, %s562_s26 }
  0x22   : > { %p559_p1 = pnand %p557_p0, %p545_p3  ;;  %p565_p4 = scmp.lt.s32.totalorder %s563_s27, %s556_s20 }
  0x24   : > { %p560_p12 = pneg %p559_p1  ;;  %p566_p11 = por %p565_p4, %p564_p2 }
  0x26   : > { %p567_p6 = pnand %p566_p11, %p560_p12 }
  0x28   : > { %570 = shalt.err (!%p567_p6)
}
  0x29   : > { %490 = dma.hbm_to_vmem [thread:$0]  (!%p730_p13), %s728_s30, 192, %s150_s6, %s138_s7  }
  0x2a   : > { %p849_p9 = scmp.lt.s32.totalorder %s635_s15, 3  ;;  %p850_p7 = scmp.ge.s32.totalorder %s635_s15, 1 }
  0x2c   : > { %p155_p5 = pnand %p850_p7, %p849_p9 }
  0x2d   : > { %s755_s28 = sand.u32 (!%p155_p5), 1, %s627_s13   ;;  %p851_p6 = scmp.ne.s32.totalorder (!%p155_p5), %s845_s22, 0 }
  0x2e   : > { %158 = sbr.rel (%p155_p5) target bundleno = 428 (0x1ac), region = 32  ;;  %s161_s5 = scalar_lea.sflag (!%p155_p5), [#allocation3], %s755_s28 }
  0x2f   : > { %s482_s29 = smul.u32 (!%p155_p5), 12, %s755_s28 }
  0x31   : > { %s164_s8 = scalar_lea.vmem (!%p155_p5), [#allocation2], %s482_s29 }
  0x33   : > { %614 = dma.done.wait (%p851_p6), %s161_s5, 192  }
  0x34   : > { %616 = vsyncadd (%p851_p6), %s161_s5, 4294967104  ;;  %v188_v0 = vld [vmem:[%s164_s8 + $0x8] sm:$0xf]  ;;  %v763_v1 = vld [vmem:[%s164_s8] sm:$0xff]  ;;  %s638_s30 = smov 96   ;;  %s639_s4 = smov 94  }
  0x35   : > { %254 = vrot.lane.b32.xlu1 %v188_v0, %s638_s30  ;;  %276 = vrot.lane.b32.xlu0 %v188_v0, %s639_s4  ;;  %v767_v2 = vcombine.high %v763_v1, %v763_v1  ;;  %s640_s6 = smov 95   ;;  %v194_v3 = vcombine.low %v188_v0, %v188_v0  ;;  %v193_v4 = vcombine.low %v763_v1, %v763_v1  ;;  %s641_s22 = smov 111   ;;  %v645_v5 = vmov 0.0   ;;  %v291_v7 = vld [vmem:[%s841_s2] sm:$0xff] }
  0x36   : > { %s642_s7 = smov 110   ;;  %s643_s9 = smov 126   ;;  %369 = vmatprep.mubr.f32.mxu0 %v645_v5  ;;  %v646_v6 = vmov 0   ;;  %vm278_vm0 = vcmask 769024   ;;  %vm281_vm1 = vcmask 1043456   ;;  %vm267_vm2 = vcmask 777216  }
  0x37   : > { %s644_s10 = smov 112   ;;  %539 = vset.pattern.permute.xlu0 %v646_v6  ;;  %s647_s11 = smov 127   ;;  %vm256_vm3 = vcmask 785408   ;;  %vm234_vm4 = vcmask 908288   ;;  %vm245_vm5 = vcmask 900096   ;;  %vm212_vm6 = vcmask 1031168  }
  0x38   : > { %vm223_vm7 = vcmask 916480   ;;  %vm201_vm8 = vcmask 1039360   ;;  %v290_v56 = vld [vmem:[%s840_s1] sm:$0xff]  ;;  %vm297_vm9 = vcmask 293888   ;;  %s470_s26 = sshll.u32 %s755_s28, 4  ;;  %s479_s27 = sshll.u32 %s690_s16, 8 }
  0x39   : > { %263 = vrot.lane.b32.xlu0 %v763_v1, %s640_s6  ;;  %252 = vrot.lane.b32.xlu1 %v767_v2, %s638_s30  ;;  %s186_s29 = scalar_lea.vmem [#allocation5], %s470_s26  ;;  %p852_p12 = scmp.ne.s32.totalorder %s846_s23, 0 }
  0x3a   : > { %s395_s5 = sshll.u32 %s186_s29, 4  ;;  %s396_s5 = int_to_ptr.vmem [resolvable:$true] %s395_s5 }
  0x3d   : > { %265 = vrot.lane.b32.xlu1 %v194_v3, %s640_s6  ;;  %274 = vrot.lane.b32.xlu0 %v767_v2, %s639_s4 }
  0x41   : > { %250 = vrot.lane.b32.xlu1 %v763_v1, %s638_s30  ;;  %272 = vrot.lane.b32.xlu0 %v763_v1, %s639_s4  ;;  %s393_s4 = scalar_lea.hbm %s842_s3, %s479_s27 }
  0x45   : > { %230 = vrot.lane.b32.xlu1 %v767_v2, %s641_s22  ;;  %261 = vrot.lane.b32.xlu0 %v193_v4, %s640_s6  ;;  %s381_s6 = scalar_lea.sflag [#allocation4], %s755_s28 }
  0x49   : > { %241 = vrot.lane.b32.xlu1 %v763_v1, %s642_s7  ;;  %232 = vrot.lane.b32.xlu0 %v188_v0, %s641_s22 }
  0x4d   : > { %228 = vrot.lane.b32.xlu1 %v763_v1, %s641_s22  ;;  %243 = vrot.lane.b32.xlu0 %v194_v3, %s642_s7  ;;  %s571_s22 = scalar_lea.vmem %s396_s5, 256 }
  0x4e   : > { %p572_p11 = scmp.ne.s32.totalorder %s396_s5, %s571_s22 }
  0x50   : > { %p573_p13 = pnand %p572_p11, %p852_p12 }
  0x51   : > { %208 = vrot.lane.b32.xlu1 %v767_v2, %s643_s9  ;;  %239 = vrot.lane.b32.xlu0 %v193_v4, %s642_s7  ;;  %s648_s7 = smov [#allocation5]  }
  0x52   : > { %p574_p0 = pneg %p573_p13  ;;  %s575_s16 = sshll.u32 %s648_s7, 4  ;;  %s576_s16 = int_to_ptr.vmem [resolvable:$false] %s575_s16 }
  0x53   : > { %p578_p1 = scmp.lt.s32.totalorder %s396_s5, %s576_s16 }
  0x55   : > { %219 = vrot.lane.b32.xlu1 %v763_v1, %s644_s10  ;;  %210 = vrot.lane.b32.xlu0 %v188_v0, %s643_s9 }
  0x59   : > { %206 = vrot.lane.b32.xlu1 %v763_v1, %s643_s9  ;;  %221 = vrot.lane.b32.xlu0 %v194_v3, %s644_s10  ;;  %s577_s9 = scalar_lea.vmem %s576_s16, 512 }
  0x5a   : > { %p579_p3 = scmp.lt.s32.totalorder %s577_s9, %s571_s22 }
  0x5c   : > { %p580_p8 = por %p579_p3, %p578_p1 }
  0x5d   : > { %197 = vrot.lane.b32.xlu1 %v763_v1, %s647_s11  ;;  %217 = vrot.lane.b32.xlu0 %v193_v4, %s644_s10 }
  0x5e   : > { %p581_p10 = pnand %p580_p8, %p574_p0 }
  0x61   : > { %195 = vrot.lane.b32.xlu1 %v193_v4, %s647_s11  ;;  %199 = vrot.lane.b32.xlu0 %v194_v3, %s647_s11 }
  0x65   : > { %294 = vperm.xlu0 %539, %v291_v7  }
  0xa7   : > { %v255_v8 = vpop.permute.xlu1 %254  ;;  %v277_v9 = vpop.permute.xlu0 %276 }
  0xab   : > { %v264_v10 = vpop.permute.xlu0 %263  ;;  %v253_v11 = vpop.permute.xlu1 %252 }
  0xac   : > { %v258_v18 = vsel %vm256_vm3, %v253_v11, %v255_v8 }
  0xaf   : > { %v266_v12 = vpop.permute.xlu1 %265  ;;  %v275_v13 = vpop.permute.xlu0 %274 }
  0xb0   : > { %v280_v14 = vsel %vm278_vm0, %v275_v13, %v277_v9  ;;  %v269_v15 = vsel %vm267_vm2, %v264_v10, %v266_v12 }
  0xb1   : > { %471 = vmatprep.subr.msk.mxu0 %vm281_vm1, %v280_v14  ;;  %v289_v20 = vsel %vm281_vm1, %v258_v18, %v269_v15 }
  0xb3   : > { %v251_v16 = vpop.permute.xlu1 %250  ;;  %v273_v17 = vpop.permute.xlu0 %272 }
  0xb4   : > { %v279_v19 = vsel %vm278_vm0, %v273_v17, %v275_v13  ;;  %v257_v23 = vsel %vm256_vm3, %v251_v16, %v253_v11 }
  0xb5   : > { %472 = vmatpush1.msk.msra.mxu0 %vm281_vm1, %v279_v19 }
  0xb6   : > { %329 = vmatprep.subr.mxu0 %v289_v20 }
  0xb7   : > { %v231_v21 = vpop.permute.xlu1 %230  ;;  %v262_v22 = vpop.permute.xlu0 %261 }
  0xb8   : > { %v268_v24 = vsel %vm267_vm2, %v262_v22, %v264_v10 }
  0xb9   : > { %v288_v25 = vsel %vm281_vm1, %v257_v23, %v268_v24 }
  0xba   : > { %330 = vmatpush1.msra.mxu0 %v288_v25 }
  0xbb   : > { %v242_v26 = vpop.permute.xlu1 %241  ;;  %v233_v27 = vpop.permute.xlu0 %232 }
  0xbc   : > { %v236_v30 = vsel %vm234_vm4, %v231_v21, %v233_v27 }
  0xbf   : > { %v229_v28 = vpop.permute.xlu1 %228  ;;  %v244_v29 = vpop.permute.xlu0 %243 }
  0xc0   : > { %v247_v31 = vsel %vm245_vm5, %v242_v26, %v244_v29  ;;  %v235_v35 = vsel %vm234_vm4, %v229_v28, %v231_v21 }
  0xc1   : > { %v287_v32 = vsel %vm281_vm1, %v236_v30, %v247_v31 }
  0xc2   : > { %331 = vmatprep.subr.mxu0 %v287_v32 }
  0xc3   : > { %v209_v33 = vpop.permute.xlu1 %208  ;;  %v240_v34 = vpop.permute.xlu0 %239 }
  0xc4   : > { %v246_v36 = vsel %vm245_vm5, %v240_v34, %v242_v26 }
  0xc5   : > { %v286_v37 = vsel %vm281_vm1, %v235_v35, %v246_v36 }
  0xc6   : > { %332 = vmatpush1.msra.mxu0 %v286_v37 }
  0xc7   : > { %v220_v38 = vpop.permute.xlu1 %219  ;;  %v211_v39 = vpop.permute.xlu0 %210 }
  0xc8   : > { %v214_v42 = vsel %vm212_vm6, %v209_v33, %v211_v39 }
  0xcb   : > { %v207_v40 = vpop.permute.xlu1 %206  ;;  %v222_v41 = vpop.permute.xlu0 %221 }
  0xcc   : > { %v225_v43 = vsel %vm223_vm7, %v220_v38, %v222_v41  ;;  %v213_v47 = vsel %vm212_vm6, %v207_v40, %v209_v33 }
  0xcd   : > { %v285_v44 = vsel %vm281_vm1, %v214_v42, %v225_v43 }
  0xce   : > { %333 = vmatprep.subr.mxu0 %v285_v44 }
  0xcf   : > { %v198_v45 = vpop.permute.xlu1 %197  ;;  %v218_v46 = vpop.permute.xlu0 %217 }
  0xd0   : > { %v224_v48 = vsel %vm223_vm7, %v218_v46, %v220_v38 }
  0xd1   : > { %v284_v49 = vsel %vm281_vm1, %v213_v47, %v224_v48 }
  0xd2   : > { %334 = vmatpush1.msra.mxu0 %v284_v49 }
  0xd3   : > { %v196_v50 = vpop.permute.xlu1 %195  ;;  %v200_v51 = vpop.permute.xlu0 %199 }
  0xd4   : > { %v202_v52 = vsel %vm201_vm8, %v196_v50, %v198_v45  ;;  %v203_v53 = vsel %vm201_vm8, %v198_v45, %v200_v51 }
  0xd5   : > { %v283_v54 = vsel %vm281_vm1, %v767_v2, %v203_v53  ;;  %v282_v55 = vsel %vm281_vm1, %v763_v1, %v202_v52 }
  0xd6   : > { %335 = vmatprep.subr.mxu0 %v283_v54 }
  0xd7   : > { %336 = vmatpush1.msra.mxu0 %v282_v55 }
  0xd8   : > { %473 = vmatmul.mubr.msk.f32.vlgmr.msra.gmra.mxu0 %vm297_vm9, %v290_v56 }
  0xe0   : > { %v295_v57 = vpop.permute.xlu0 %294 }
 0x198   : > { %v371_v58 = vpop.f32.mrf.mxu0 }
 0x199   : > { %v372_v59 = vadd.f32 %v371_v58, %v295_v57 }
 0x19a   : > { %v373_v60 = vpop.f32.mrf.mxu0 }
 0x19b   : > { %v376_v61 = vmax.f32 %v372_v59, 0.0  ;;  %v374_v62 = vadd.f32 %v373_v60, %v295_v57 }
 0x19d   : > { %378 = vst [vmem:[%s186_s29] sm:$0xff] %v376_v61  ;;  %v377_v63 = vmax.f32 %v374_v62, 0.0 }
 0x19f   : > { %379 = vst [vmem:[%s186_s29 + $0x8] sm:$0xff] %v377_v63 }
 0x1a0   : > { %584 = shalt.err (!%p581_p10)
}
 0x1a1   : > { %s585_s10 = scalar_lea.hbm %s393_s4, 256  ;;  %s589_s17 = scalar_lea.hbm %s842_s3, 512 }
 0x1a2   : > { %p586_p2 = scmp.ne.s32.totalorder %s393_s4, %s585_s10  ;;  %p590_p7 = scmp.lt.s32.totalorder %s393_s4, %s842_s3 }
 0x1a3   : > { %p591_p5 = scmp.lt.s32.totalorder %s589_s17, %s585_s10 }
 0x1a4   : > { %p587_p4 = pnand %p586_p2, %p852_p12 }
 0x1a5   : > { %p592_p6 = por %p591_p5, %p590_p7 }
 0x1a6   : > { %p588_p9 = pneg %p587_p4 }
 0x1a8   : > { %p593_p11 = pnand %p592_p6, %p588_p9 }
 0x1aa   : > { %596 = shalt.err (!%p593_p11)
}
 0x1ab   : > { %485 = dma.vmem_to_hbm [thread:$0]  (%p852_p12), %s396_s5, 256, %s393_s4, %s381_s6  }
 0x1ac PF: > { %s407_s25 = sand.u32 1, %s623_s12   ;;  %p853_p13 = scmp.ne.s32.totalorder %s847_s24, 0 }
 0x1ad   : > { %p854_p0 = scmp.ge.s32.totalorder %s635_s15, 2  ;;  %s408_s26 = scalar_lea.sflag [#allocation4], %s407_s25 }
 0x1af   : > { %p492_p1 = pnand %p854_p0, %p853_p13 }
 0x1b1   : > { %p493_p3 = pneg %p492_p1 }
 0x1b3   : > { %618 = dma.done.wait (%p493_p3), %s408_s26, 256  }
 0x1b4   : > { %620 = vsyncadd (%p493_p3), %s408_s26, 4294967040  ;;  %p16_p8 = scmp.ge.s32.totalorder %s694_s18, 4   ;;  %s855_s12 = smov %s627_s13 }
 0x1b5   : > { %s856_s13 = smov %s631_s14  ;;  %s857_s14 = smov %s706_s21 }
 0x1b6   : > { %s858_s15 = smov %s694_s18  ;;  %18 = sbr.rel (!%p16_p8) target bundleno = 5 (0x5), region = 77 }
 0x1bb   :  { %413 = vsyncpa [#allocation3], 1 }
 0x1bc   :  { %415 = vsyncpa [#allocation3 + $0x1], 1 }
 0x1bd   :  { %416 = vsyncpa [#allocation4], 1 }
 0x1be   :  { %418 = vsyncpa [#allocation4 + $0x1], 1 }

</bundles_post_ra>
